<compile_context>
chip_gen: v7x
topology: tpu7x:2x2x1
jax: 0.10.0
libtpu: 0.0.40
codegen_flags: <defaults>
</compile_context>

<pallas_src>
import jax
import jax.numpy as jnp
from jax.experimental import pallas as pl
from jax.experimental.pallas import tpu as pltpu

_LANES = 128
# Below this many elements use a single gridless whole-array call (per-grid-step
# overhead ~0.35 us buys nothing when the slab fits comfortably in VMEM).
_GRIDLESS_MAX_ELEMS = 1 << 20       # 1M elems == 4 MiB f32
_BLOCK_ROWS = 1024                  # lane-dense blocks for the large-input case


def _relu_kernel(x_ref, o_ref):
    # Pure VPU elementwise max with a weak-typed 0 (no zeros broadcast, no
    # dtype casts -> stays in the native dtype on all generations).
    o_ref[...] = jnp.maximum(x_ref[...], 0)


def relu_pallas(x: jax.Array) -> jax.Array:
    """Elementwise ReLU matching the forward of torch.nn.ReLU."""
    orig_shape = x.shape
    n = x.size

    if n == 0 or n % _LANES != 0:
        # Ragged sizes: a standalone padded pallas_call is strictly slower than
        # letting XLA emit (and fuse) the elementwise max.
        return jnp.maximum(x, 0)

    # Lane-dense 2D slab: widest last dim (multiple of 128) that divides n.
    cols = _LANES
    for c in (512, 256):
        if n % c == 0:
            cols = c
            break
    rows = n // cols
    x2d = x.reshape(rows, cols)

    if n <= _GRIDLESS_MAX_ELEMS:
        # Small activation: leanest possible codegen — gridless, whole slab
        # resident in VMEM, out-of-place (no defensive-copy risk).
        out = pl.pallas_call(
            _relu_kernel,
            out_shape=jax.ShapeDtypeStruct((rows, cols), x.dtype),
            in_specs=[pl.BlockSpec(memory_space=pltpu.MemorySpace.VMEM)],
            out_specs=pl.BlockSpec(memory_space=pltpu.MemorySpace.VMEM),
        )(x2d)
    else:
        # Generalized path for multi-MiB activations: 1-D parallel grid of
        # lane-dense blocks (~85%+ of HBM roofline at this tile size).
        out = pl.pallas_call(
            _relu_kernel,
            out_shape=jax.ShapeDtypeStruct((rows, cols), x.dtype),
            grid=(pl.cdiv(rows, _BLOCK_ROWS),),
            in_specs=[pl.BlockSpec((_BLOCK_ROWS, cols), lambda i: (i, 0))],
            out_specs=pl.BlockSpec((_BLOCK_ROWS, cols), lambda i: (i, 0)),
            compiler_params=pltpu.CompilerParams(
                dimension_semantics=("parallel",)),
        )(x2d)

    return out.reshape(orig_shape)


if __name__ == "__main__":
    key = jax.random.PRNGKey(0)
    # Shape implied by the module's forward: x460 ~ [1, 128, 14, 14]
    x460 = jax.random.normal(key, (1, 128, 14, 14), dtype=jnp.float32)

    y = relu_pallas(x460)
    jax.block_until_ready(y)

    ref = jnp.maximum(x460, 0.0)
    assert y.shape == x460.shape
    assert y.dtype == x460.dtype
    assert jnp.allclose(y, ref), "Pallas ReLU mismatch vs reference"

    # Exercise the ragged-size fallback (plain XLA maximum) as well.
    x_odd = jax.random.normal(jax.random.PRNGKey(1), (3, 5, 7), dtype=jnp.float32)
    y_odd = relu_pallas(x_odd)
    jax.block_until_ready(y_odd)
    assert jnp.allclose(y_odd, jnp.maximum(x_odd, 0.0)), "Fallback ReLU mismatch"

    print("KERNEL_OK")
</pallas_src>

<mosaic_0001>
module attributes {stable_mosaic.version = 11 : i64} {
  func.func @_relu_kernel(%arg0: memref<49x512xf32, #tpu.memory_space<vmem>>, %arg1: memref<49x512xf32, #tpu.memory_space<vmem>>) attributes {dimension_semantics = [], scalar_prefetch = 0 : i64, scratch_operands = 0 : i64, tpu.core_type = #tpu.core_type<tc>} {
    %c0 = arith.constant 0 : index
    %c0_0 = arith.constant 0 : index
    %0 = vector.load %arg0[%c0, %c0_0] : memref<49x512xf32, #tpu.memory_space<vmem>>, vector<49x512xf32>
    %cst = arith.constant 0.000000e+00 : f32
    %1 = vector.broadcast %cst : f32 to vector<49x512xf32>
    %2 = arith.maximumf %0, %1 : vector<49x512xf32>
    %c0_1 = arith.constant 0 : index
    %c0_2 = arith.constant 0 : index
    %3 = vector.load %arg1[%c0_1, %c0_2] : memref<49x512xf32, #tpu.memory_space<vmem>>, vector<49x512xf32>
    tpu.vector_store %arg1[%c0_1, %c0_2], %2 {strides = array<i32>} : memref<49x512xf32, #tpu.memory_space<vmem>>, vector<49x512xf32>,
    return
  }
}

</mosaic_0001>

<bundles_post_ra>
// kernel: tpu_custom_call.1
= control target key start
LH: loop header
LB: loop body
LE: loop exit
PB: predicated region body
PF: predicated region fallthrough
CT: control target
= control target key end

     0   :  { %6 = vsyncpa [#allocation3], 0  ;;  %s220_s0 = inlined_call_operand.hbm [shape: f32[49,512], index: 0, kind: input, shape index: {}]   ;;  %s221_s1 = inlined_call_operand.hbm [shape: f32[49,512], index: 1, kind: output, shape index: {}]  }
   0x1   :  { %7 = vsyncpa [#allocation4], 0  ;;  %s176_s6 = smov [#allocation2]   ;;  %s128_s10 = scalar_lea.hbm %s220_s0, 3584 }
   0x2   :  { %s13_s7 = sshll.u32 %s176_s6, 4  ;;  %p129_p0 = scmp.ne.s32.totalorder %s220_s0, %s128_s10  ;;  %s14_s7 = int_to_ptr.vmem [resolvable:$true] %s13_s7 }
   0x3   :  { %p132_p1 = scmp.lt.u32.totalorder %s128_s10, %s220_s0 }
   0x5   :  { %p134_p2 = pnand %p132_p1, %p129_p0 }
   0x7   :  { %137 = shalt.err (!%p134_p2)
}
   0x8   :  { %s138_s15 = scalar_lea.vmem %s14_s7, 3584  ;;  %p143_p4 = scmp.lt.s32.totalorder %s14_s7, %s14_s7 }
   0x9   :  { %p139_p3 = scmp.ne.s32.totalorder %s14_s7, %s138_s15  ;;  %p144_p5 = scmp.lt.s32.totalorder %s138_s15, %s138_s15 }
   0xb   :  { %p145_p6 = por %p144_p5, %p143_p4 }
   0xd   :  { %p146_p7 = pnand %p145_p6, %p139_p3 }
   0xf   :  { %149 = shalt.err (!%p146_p7)
}
  0x10   :  { %s177_s16 = smov 512   ;;  %s178_s17 = smov 32  }
  0x11   :  { %19 = dma.hbm_to_vmem [thread:$0]  %s220_s0, 3584, %s14_s7, [#allocation3], %s177_s16, %s177_s16, %s178_s17  }
  0x12   :  { %172 = dma.done.wait [#allocation3], 3584  }
  0x13   :  { %173 = vsyncadd [#allocation3], 4294963712  ;;  %v23_v0 = vld [vmem:[#allocation2] sm:$0xff]  ;;  %v24_v1 = vld [vmem:[#allocation2 + $0x8] sm:$0xff]  ;;  %s179_s0 = smov [#allocation5]  }
  0x14   :  { %v25_v2 = vld [vmem:[#allocation2 + $0x10] sm:$0xff]  ;;  %v51_v3 = vmax.f32 %v23_v0, 0.0  ;;  %v52_v4 = vmax.f32 %v24_v1, 0.0  ;;  %v26_v6 = vld [vmem:[#allocation2 + $0x18] sm:$0xff]  ;;  %v27_v7 = vld [vmem:[#allocation2 + $0x20] sm:$0xff]  ;;  %s112_s20 = sshll.u32 %s179_s0, 4  ;;  %s113_s20 = int_to_ptr.vmem [resolvable:$true] %s112_s20 }
  0x15   :  { %v53_v5 = vmax.f32 %v25_v2, 0.0  ;;  %v28_v8 = vld [vmem:[#allocation2 + $0x28] sm:$0xff]  ;;  %v54_v9 = vmax.f32 %v26_v6, 0.0  ;;  %v55_v10 = vmax.f32 %v27_v7, 0.0  ;;  %v29_v12 = vld [vmem:[#allocation2 + $0x30] sm:$0xff]  ;;  %v30_v13 = vld [vmem:[#allocation2 + $0x38] sm:$0xff]  ;;  %p155_p9 = scmp.lt.s32.totalorder %s113_s20, %s113_s20 }
  0x16   :  { %v56_v11 = vmax.f32 %v28_v8, 0.0  ;;  %v31_v14 = vld [vmem:[#allocation2 + $0x40] sm:$0xff]  ;;  %79 = vst [vmem:[#allocation5] sm:$0xff] %v51_v3  ;;  %80 = vst [vmem:[#allocation5 + $0x8] sm:$0xff] %v52_v4  ;;  %v57_v15 = vmax.f32 %v29_v12, 0.0  ;;  %v58_v16 = vmax.f32 %v30_v13, 0.0 }
  0x17   :  { %81 = vst [vmem:[#allocation5 + $0x10] sm:$0xff] %v53_v5  ;;  %v59_v17 = vmax.f32 %v31_v14, 0.0  ;;  %v32_v18 = vld [vmem:[#allocation2 + $0x48] sm:$0xff]  ;;  %v33_v19 = vld [vmem:[#allocation2 + $0x50] sm:$0xff]  ;;  %v34_v20 = vld [vmem:[#allocation2 + $0x58] sm:$0xff]  ;;  %s150_s21 = scalar_lea.vmem %s113_s20, 3584 }
  0x18   :  { %82 = vst [vmem:[#allocation5 + $0x18] sm:$0xff] %v54_v9  ;;  %83 = vst [vmem:[#allocation5 + $0x20] sm:$0xff] %v55_v10  ;;  %v60_v21 = vmax.f32 %v32_v18, 0.0  ;;  %v61_v22 = vmax.f32 %v33_v19, 0.0  ;;  %v62_v23 = vmax.f32 %v34_v20, 0.0  ;;  %v35_v24 = vld [vmem:[#allocation2 + $0x60] sm:$0xff]  ;;  %p151_p8 = scmp.ne.s32.totalorder %s113_s20, %s150_s21  ;;  %p156_p10 = scmp.lt.s32.totalorder %s150_s21, %s150_s21 }
  0x19   :  { %84 = vst [vmem:[#allocation5 + $0x28] sm:$0xff] %v56_v11  ;;  %v36_v25 = vld [vmem:[#allocation2 + $0x68] sm:$0xff]  ;;  %v37_v26 = vld [vmem:[#allocation2 + $0x70] sm:$0xff]  ;;  %85 = vst [vmem:[#allocation5 + $0x30] sm:$0xff] %v57_v15  ;;  %v63_v27 = vmax.f32 %v35_v24, 0.0 }
  0x1a   :  { %86 = vst [vmem:[#allocation5 + $0x38] sm:$0xff] %v58_v16  ;;  %87 = vst [vmem:[#allocation5 + $0x40] sm:$0xff] %v59_v17  ;;  %v64_v28 = vmax.f32 %v36_v25, 0.0  ;;  %v65_v29 = vmax.f32 %v37_v26, 0.0  ;;  %v38_v30 = vld [vmem:[#allocation2 + $0x78] sm:$0xff]  ;;  %v39_v31 = vld [vmem:[#allocation2 + $0x80] sm:$0xff]  ;;  %p157_p11 = por %p156_p10, %p155_p9 }
  0x1b   :  { %v40_v32 = vld [vmem:[#allocation2 + $0x88] sm:$0xff]  ;;  %88 = vst [vmem:[#allocation5 + $0x48] sm:$0xff] %v60_v21  ;;  %89 = vst [vmem:[#allocation5 + $0x50] sm:$0xff] %v61_v22  ;;  %v66_v33 = vmax.f32 %v38_v30, 0.0  ;;  %v67_v34 = vmax.f32 %v39_v31, 0.0  ;;  %v41_v36 = vld [vmem:[#allocation2 + $0x90] sm:$0xff] }
  0x1c   :  { %90 = vst [vmem:[#allocation5 + $0x58] sm:$0xff] %v62_v23  ;;  %v68_v35 = vmax.f32 %v40_v32, 0.0  ;;  %v42_v37 = vld [vmem:[#allocation2 + $0x98] sm:$0xff]  ;;  %v43_v38 = vld [vmem:[#allocation2 + $0xa0] sm:$0xff]  ;;  %91 = vst [vmem:[#allocation5 + $0x60] sm:$0xff] %v63_v27  ;;  %v69_v39 = vmax.f32 %v41_v36, 0.0  ;;  %p158_p12 = pnand %p157_p11, %p151_p8 }
  0x1d   :  { %92 = vst [vmem:[#allocation5 + $0x68] sm:$0xff] %v64_v28  ;;  %93 = vst [vmem:[#allocation5 + $0x70] sm:$0xff] %v65_v29  ;;  %v70_v40 = vmax.f32 %v42_v37, 0.0  ;;  %v71_v41 = vmax.f32 %v43_v38, 0.0  ;;  %v44_v42 = vld [vmem:[#allocation2 + $0xa8] sm:$0xff]  ;;  %v45_v43 = vld [vmem:[#allocation2 + $0xb0] sm:$0xff] }
  0x1e   :  { %v46_v44 = vld [vmem:[#allocation2 + $0xb8] sm:$0xff]  ;;  %94 = vst [vmem:[#allocation5 + $0x78] sm:$0xff] %v66_v33  ;;  %95 = vst [vmem:[#allocation5 + $0x80] sm:$0xff] %v67_v34  ;;  %v72_v45 = vmax.f32 %v44_v42, 0.0  ;;  %v73_v46 = vmax.f32 %v45_v43, 0.0 }
  0x1f   :  { %96 = vst [vmem:[#allocation5 + $0x88] sm:$0xff] %v68_v35  ;;  %v74_v47 = vmax.f32 %v46_v44, 0.0  ;;  %v47_v48 = vld [vmem:[#allocation2 + $0xc0] sm:$0x1]  ;;  %97 = vst [vmem:[#allocation5 + $0x90] sm:$0xff] %v69_v39 }
  0x20   :  { %98 = vst [vmem:[#allocation5 + $0x98] sm:$0xff] %v70_v40  ;;  %99 = vst [vmem:[#allocation5 + $0xa0] sm:$0xff] %v71_v41  ;;  %v75_v49 = vmax.f32 %v47_v48, 0.0  ;;  %v48_v50 = vld [vmem:[#allocation2 + $0xc8] sm:$0x1] }
  0x21   :  { %v49_v51 = vld [vmem:[#allocation2 + $0xd0] sm:$0x1]  ;;  %100 = vst [vmem:[#allocation5 + $0xa8] sm:$0xff] %v72_v45  ;;  %101 = vst [vmem:[#allocation5 + $0xb0] sm:$0xff] %v73_v46  ;;  %v76_v52 = vmax.f32 %v48_v50, 0.0 }
  0x22   :  { %102 = vst [vmem:[#allocation5 + $0xb8] sm:$0xff] %v74_v47  ;;  %v77_v53 = vmax.f32 %v49_v51, 0.0  ;;  %v50_v54 = vld [vmem:[#allocation2 + $0xd8] sm:$0x1]  ;;  %103 = vst [vmem:[#allocation5 + $0xc0] sm:$0x1] %v75_v49 }
  0x23   :  { %v78_v55 = vmax.f32 %v50_v54, 0.0  ;;  %104 = vst [vmem:[#allocation5 + $0xc8] sm:$0x1] %v76_v52 }
  0x24   :  { %105 = vst [vmem:[#allocation5 + $0xd0] sm:$0x1] %v77_v53 }
  0x25   :  { %106 = vst [vmem:[#allocation5 + $0xd8] sm:$0x1] %v78_v55 }
  0x26   :  { %161 = shalt.err (!%p158_p12)
}
  0x27   :  { %s162_s24 = scalar_lea.hbm %s221_s1, 3584 }
  0x28   :  { %p163_p13 = scmp.ne.s32.totalorder %s221_s1, %s162_s24  ;;  %p166_p0 = scmp.lt.u32.totalorder %s162_s24, %s221_s1 }
  0x2a   :  { %p168_p1 = pnand %p166_p0, %p163_p13 }
  0x2c   :  { %171 = shalt.err (!%p168_p1)
}
  0x2d   :  { %118 = dma.vmem_to_hbm [thread:$0]  %s113_s20, 3584, %s221_s1, [#allocation4], %s177_s16, %s177_s16, %s178_s17  }
  0x2e   :  { %174 = dma.done.wait [#allocation4], 3584  }
  0x2f   :  { %175 = vsyncadd [#allocation4], 4294963712 }
  0x30   :  { %122 = vsyncpa [#allocation3], 1 }
  0x31   :  { %123 = vsyncpa [#allocation4], 1 }

</bundles_post_ra>
